<compile_context>
chip_gen: v7x
topology: tpu7x:2x2x1
jax: 0.10.0
libtpu: 0.0.40
codegen_flags: <defaults>
</compile_context>

<pallas_src>
import functools
import math

import jax
import jax.numpy as jnp
from jax.experimental import pallas as pl
from jax.experimental.pallas import tpu as pltpu

_TARGET_TILE_BYTES = 2 * 1024 * 1024      # ~2 MiB per array per block
_LANE_WIDTHS = (1024, 512, 256, 128)      # lane-dense candidates (x128)


def _lif_kernel(v_ref, x_ref, v_out_ref, spk_ref, *, beta, u_th):
    # v' = v*beta + x ; spike = Heaviside(v' - u_th) ; v'' = v' - spike*u_th
    # Boundary convention: strict '>' at v' == u_th (no spike at exact equality).
    v = v_ref[...] * beta + x_ref[...]
    fired = v > u_th
    spk_ref[...] = fired.astype(v.dtype)
    # Reuse the comparison: v - spike*u_th == where(fired, v - u_th, v)
    # (saves one vmul per element vs. spk * u_th).
    v_out_ref[...] = jnp.where(fired, v - u_th, v)


def _choose_layout(total, itemsize):
    """Pick a lane-dense 2-D view [rows, width] and a row-tile size."""
    for width in _LANE_WIDTHS:
        if total % width == 0:
            pad = 0
            break
    else:
        width = 128
        pad = (-total) % 128
    rows = (total + pad) // width
    # ~2 MiB per block per array; row tile must be a multiple of 8 sublanes.
    tm = max(8, (_TARGET_TILE_BYTES // (width * itemsize)) // 8 * 8)
    if rows <= tm:
        tm = rows  # single block == full array (always a legal block shape)
    return width, pad, rows, tm


def lif_step(v, x, beta, u_th):
    """One LIF timestep. v, x: same shape/dtype. Returns (new_v, spike)."""
    assert v.shape == x.shape and v.dtype == x.dtype
    orig_shape = x.shape
    total = math.prod(orig_shape)
    itemsize = jnp.dtype(x.dtype).itemsize
    width, pad, rows, tm = _choose_layout(total, itemsize)

    if pad:
        # Rare ragged-tail path: zero-pad (v=0, x=0 -> spike=0, harmless).
        # TODO(synk): handle the ragged tail with an in-kernel masked store
        # instead of these extra HBM copies.
        zeros = jnp.zeros((pad,), x.dtype)
        v2d = jnp.concatenate([v.reshape(-1), zeros]).reshape(rows, width)
        x2d = jnp.concatenate([x.reshape(-1), zeros]).reshape(rows, width)
    else:
        # Free reshapes (no data movement) -- no padding, no slicing.
        v2d = v.reshape(rows, width)
        x2d = x.reshape(rows, width)

    block = pl.BlockSpec((tm, width), lambda i: (i, 0))
    # NOTE: beta/u_th are baked as compile-time constants; if they were
    # learnable per-layer parameters they should be passed as SMEM scalars
    # to avoid recompiles per (beta, u_th) pair.
    kernel = functools.partial(_lif_kernel, beta=float(beta), u_th=float(u_th))

    new_v2d, spk2d = pl.pallas_call(
        kernel,
        out_shape=(
            jax.ShapeDtypeStruct((rows, width), x.dtype),
            jax.ShapeDtypeStruct((rows, width), x.dtype),
        ),
        grid=(pl.cdiv(rows, tm),),
        in_specs=[block, block],
        out_specs=(block, block),
        # v is module state updated in place: alias new_v onto the v input.
        input_output_aliases={0: 0},
        compiler_params=pltpu.CompilerParams(
            dimension_semantics=("parallel",),
        ),
    )(v2d, x2d)

    if pad:
        new_v = new_v2d.reshape(-1)[:total].reshape(orig_shape)
        spk = spk2d.reshape(-1)[:total].reshape(orig_shape)
    else:
        new_v = new_v2d.reshape(orig_shape)
        spk = spk2d.reshape(orig_shape)
    return new_v, spk


class LIF:
    """Stateful JAX/Pallas mirror of the PyTorch LIF module."""

    def __init__(self, beta, u_th):
        self.beta = float(beta)
        self.u_th = float(u_th)
        self.v = None

    def __call__(self, x):
        if self.v is None:
            self.v = jnp.zeros_like(x)
        self.v, out = lif_step(self.v, x, self.beta, self.u_th)
        return out

    def reset(self):
        self.v = None


def _lif_ref(v, x, beta, u_th):
    v = v * beta + x
    spk = (v > u_th).astype(v.dtype)
    v = v - spk * u_th
    return v, spk


if __name__ == "__main__":
    key = jax.random.PRNGKey(0)
    beta, u_th = 0.9, 1.0
    ok = True

    # Primary test: small conv-style NCHW input, 3 stateful timesteps.
    B, C, H, W = 2, 4, 16, 16
    lif = LIF(beta, u_th)
    v_ref = jnp.zeros((B, C, H, W), jnp.float32)
    for _ in range(3):
        key, sub = jax.random.split(key)
        x = jax.random.normal(sub, (B, C, H, W), jnp.float32) * 1.5
        out = lif(x)
        jax.block_until_ready(out)
        v_ref, out_ref = _lif_ref(v_ref, x, beta, u_th)
        ok &= bool(jnp.allclose(out, out_ref, atol=1e-6))
        ok &= bool(jnp.allclose(lif.v, v_ref, atol=1e-5))

    # Extra coverage: multi-block grid with a partial last block, and a
    # ragged (padded) element count.
    for shape in ((3, 64, 64, 64), (3, 5, 7, 9)):
        key, sub = jax.random.split(key)
        x = jax.random.normal(sub, shape, jnp.float32) * 1.5
        v0 = jax.random.normal(jax.random.fold_in(sub, 1), shape, jnp.float32)
        new_v, spk = lif_step(v0, x, beta, u_th)
        jax.block_until_ready((new_v, spk))
        v_r, s_r = _lif_ref(v0, x, beta, u_th)
        ok &= bool(jnp.allclose(spk, s_r, atol=1e-6))
        ok &= bool(jnp.allclose(new_v, v_r, atol=1e-5))

    if ok:
        print("KERNEL_OK")
    else:
        raise SystemExit("mismatch vs reference")
</pallas_src>

<mosaic_0001>
module attributes {stable_mosaic.version = 11 : i64} {
  func.func @_lif_kernel(%arg0: i32, %arg1: memref<2x1024xf32, #tpu.memory_space<vmem>>, %arg2: memref<2x1024xf32, #tpu.memory_space<vmem>>, %arg3: memref<2x1024xf32, #tpu.memory_space<vmem>>, %arg4: memref<2x1024xf32, #tpu.memory_space<vmem>>) attributes {dimension_semantics = [#tpu.dimension_semantics<parallel>], iteration_bounds = array<i64: 1>, scalar_prefetch = 0 : i64, scratch_operands = 0 : i64, tpu.core_type = #tpu.core_type<tc>, window_params = [{transform_indices = @transform_0, window_bounds = array<i64: 2, 1024>}, {transform_indices = @transform_1, window_bounds = array<i64: 2, 1024>}, {transform_indices = @transform_2, window_bounds = array<i64: 2, 1024>}, {transform_indices = @transform_3, window_bounds = array<i64: 2, 1024>}]} {
    %c0 = arith.constant 0 : index
    %c0_0 = arith.constant 0 : index
    %0 = vector.load %arg1[%c0, %c0_0] : memref<2x1024xf32, #tpu.memory_space<vmem>>, vector<2x1024xf32>
    %cst = arith.constant 0.899999976 : f32
    %1 = vector.broadcast %cst : f32 to vector<2x1024xf32>
    %2 = arith.mulf %0, %1 : vector<2x1024xf32>
    %c0_1 = arith.constant 0 : index
    %c0_2 = arith.constant 0 : index
    %3 = vector.load %arg2[%c0_1, %c0_2] : memref<2x1024xf32, #tpu.memory_space<vmem>>, vector<2x1024xf32>
    %4 = arith.addf %2, %3 : vector<2x1024xf32>
    %cst_3 = arith.constant 1.000000e+00 : f32
    %5 = vector.broadcast %cst_3 : f32 to vector<2x1024xf32>
    %6 = arith.cmpf ogt, %4, %5 : vector<2x1024xf32>
    %7 = arith.extui %6 : vector<2x1024xi1> to vector<2x1024xi32>
    %8 = arith.sitofp %7 : vector<2x1024xi32> to vector<2x1024xf32>
    %c0_4 = arith.constant 0 : index
    %c0_5 = arith.constant 0 : index
    %9 = vector.load %arg4[%c0_4, %c0_5] : memref<2x1024xf32, #tpu.memory_space<vmem>>, vector<2x1024xf32>
    tpu.vector_store %arg4[%c0_4, %c0_5], %8 {strides = array<i32>} : memref<2x1024xf32, #tpu.memory_space<vmem>>, vector<2x1024xf32>,
    %cst_6 = arith.constant 1.000000e+00 : f32
    %10 = vector.broadcast %cst_6 : f32 to vector<2x1024xf32>
    %11 = arith.subf %4, %10 : vector<2x1024xf32>
    %12 = arith.select %6, %11, %4 : vector<2x1024xi1>, vector<2x1024xf32>
    %c0_7 = arith.constant 0 : index
    %c0_8 = arith.constant 0 : index
    %13 = vector.load %arg3[%c0_7, %c0_8] : memref<2x1024xf32, #tpu.memory_space<vmem>>, vector<2x1024xf32>
    tpu.vector_store %arg3[%c0_7, %c0_8], %12 {strides = array<i32>} : memref<2x1024xf32, #tpu.memory_space<vmem>>, vector<2x1024xf32>,
    return
  }
  func.func @transform_0(%arg0: i32) -> (i32, i32) {
    %c0_i32 = arith.constant 0 : i32
    %c0_i32_0 = arith.constant 0 : i32
    return %arg0, %c0_i32 : i32, i32
  }
  func.func @transform_1(%arg0: i32) -> (i32, i32) {
    %c0_i32 = arith.constant 0 : i32
    %c0_i32_0 = arith.constant 0 : i32
    return %arg0, %c0_i32 : i32, i32
  }
  func.func @transform_2(%arg0: i32) -> (i32, i32) {
    %c0_i32 = arith.constant 0 : i32
    %c0_i32_0 = arith.constant 0 : i32
    return %arg0, %c0_i32 : i32, i32
  }
  func.func @transform_3(%arg0: i32) -> (i32, i32) {
    %c0_i32 = arith.constant 0 : i32
    %c0_i32_0 = arith.constant 0 : i32
    return %arg0, %c0_i32 : i32, i32
  }
}

</mosaic_0001>

<bundles_post_ra>
// kernel: tpu_custom_call.1
= control target key start
LH: loop header
LB: loop body
LE: loop exit
PB: predicated region body
PF: predicated region fallthrough
CT: control target
= control target key end

     0   :  { %9 = vsyncpa [#allocation3], 0  ;;  %s231_s0 = inlined_call_operand.hbm [shape: f32[2,1024], index: 0, kind: input, shape index: {}, may-alias: {0,2}]   ;;  %s232_s1 = inlined_call_operand.vmem [shape: f32[2,1024], index: 1, kind: input, shape index: {}]   ;;  %s233_s2 = inlined_call_operand.hbm [shape: f32[2,1024], index: 2, kind: output, shape index: {0}, may-alias: {0,2}]   ;;  %s234_s3 = inlined_call_operand.hbm [shape: f32[2,1024], index: 3, kind: output, shape index: {1}]  }
   0x1   :  { %10 = vsyncpa [#allocation4], 0 }
   0x2   :  { %11 = vsyncpa [#allocation7], 0  ;;  %s158_s12 = smov [#allocation2]   ;;  %s86_s16 = scalar_lea.hbm %s231_s0, 256 }
   0x3   :  { %s18_s13 = sshll.u32 %s158_s12, 4  ;;  %p87_p0 = scmp.ne.s32.totalorder %s231_s0, %s86_s16  ;;  %s19_s13 = int_to_ptr.vmem [resolvable:$true] %s18_s13 }
   0x4   :  { %p90_p1 = scmp.lt.u32.totalorder %s86_s16, %s231_s0 }
   0x6   :  { %p92_p2 = pnand %p90_p1, %p87_p0 }
   0x8   :  { %95 = shalt.err (!%p92_p2)
}
   0x9   :  { %s96_s21 = scalar_lea.vmem %s19_s13, 256  ;;  %p101_p4 = scmp.lt.s32.totalorder %s19_s13, %s19_s13 }
   0xa   :  { %p97_p3 = scmp.ne.s32.totalorder %s19_s13, %s96_s21  ;;  %p102_p5 = scmp.lt.s32.totalorder %s96_s21, %s96_s21 }
   0xc   :  { %p103_p6 = por %p102_p5, %p101_p4 }
   0xe   :  { %p104_p7 = pnand %p103_p6, %p97_p3 }
  0x10   :  { %107 = shalt.err (!%p104_p7)
}
  0x11   :  { %21 = dma.hbm_to_vmem [thread:$0]  %s231_s0, 256, %s19_s13, [#allocation3]  }
  0x12   :  { %152 = dma.done.wait [#allocation3], 256  }
  0x13   :  { %153 = vsyncadd [#allocation3], 4294967040  ;;  %v27_v0 = vld [vmem:[#allocation2] sm:$0xff]  ;;  %v28_v2 = vld [vmem:[#allocation2 + $0x8] sm:$0xff]  ;;  %s159_s28 = smov [#allocation6]   ;;  %s160_s30 = smov [#allocation5]  }
  0x14   :  { %v31_v1 = vld [vmem:[%s232_s1] sm:$0xff]  ;;  %v29_v3 = vmul.f32 0.9, %v27_v0  ;;  %v30_v4 = vmul.f32 0.9, %v28_v2  ;;  %v32_v5 = vld [vmem:[%s232_s1 + $0x8] sm:$0xff] }
  0x15   :  { %s65_s29 = sshll.u32 %s159_s28, 4  ;;  %s55_s0 = sshll.u32 %s160_s30, 4  ;;  %v161_v10 = vmov 0.0   ;;  %s66_s29 = int_to_ptr.vmem [resolvable:$true] %s65_s29  ;;  %s200_s0 = int_to_ptr.vmem [resolvable:$true] %s55_s0 }
  0x16   :  { %v33_v6 = vadd.f32 %v31_v1, %v29_v3  ;;  %v34_v7 = vadd.f32 %v32_v5, %v30_v4  ;;  %s108_s1 = scalar_lea.vmem %s66_s29, 256  ;;  %p113_p9 = scmp.lt.s32.totalorder %s66_s29, %s66_s29 }
  0x17   :  { %p109_p8 = scmp.ne.s32.totalorder %s66_s29, %s108_s1  ;;  %p114_p10 = scmp.lt.s32.totalorder %s108_s1, %s108_s1 }
  0x18   :  { %vm35_vm0 = vcmp.gt.f32.partialorder %v33_v6, 1.0  ;;  %vm36_vm1 = vcmp.gt.f32.partialorder %v34_v7, 1.0  ;;  %v80_v8 = vadd.f32 -1.0, %v33_v6  ;;  %v81_v9 = vadd.f32 -1.0, %v34_v7 }
  0x19   :  { %v78_v11 = vsel %vm35_vm0, 1.0, %v161_v10  ;;  %v79_v12 = vsel %vm36_vm1, 1.0, %v161_v10  ;;  %p115_p11 = por %p114_p10, %p113_p9 }
  0x1a   :  { %41 = vst [vmem:[#allocation6] sm:$0xff] %v78_v11  ;;  %42 = vst [vmem:[#allocation6 + $0x8] sm:$0xff] %v79_v12  ;;  %v45_v13 = vsel %vm35_vm0, %v80_v8, %v33_v6  ;;  %v46_v14 = vsel %vm36_vm1, %v81_v9, %v34_v7 }
  0x1b   :  { %47 = vst [vmem:[#allocation5] sm:$0xff] %v45_v13  ;;  %48 = vst [vmem:[#allocation5 + $0x8] sm:$0xff] %v46_v14  ;;  %p116_p12 = pnand %p115_p11, %p109_p8 }
  0x1d   :  { %119 = shalt.err (!%p116_p12)
}
  0x1e   :  { %s120_s6 = scalar_lea.hbm %s234_s3, 256 }
  0x1f   :  { %p121_p13 = scmp.ne.s32.totalorder %s234_s3, %s120_s6  ;;  %p124_p0 = scmp.lt.u32.totalorder %s120_s6, %s234_s3 }
  0x21   :  { %p126_p1 = pnand %p124_p0, %p121_p13 }
  0x23   :  { %129 = shalt.err (!%p126_p1)
}
  0x24   :  { %68 = dma.vmem_to_hbm [thread:$0]  %s66_s29, 256, %s234_s3, [#allocation7]  }
  0x25   :  { %s130_s13 = scalar_lea.vmem %s200_s0, 256  ;;  %p135_p3 = scmp.lt.s32.totalorder %s200_s0, %s200_s0 }
  0x26   :  { %p131_p2 = scmp.ne.s32.totalorder %s200_s0, %s130_s13  ;;  %p136_p4 = scmp.lt.s32.totalorder %s130_s13, %s130_s13 }
  0x28   :  { %p137_p5 = por %p136_p4, %p135_p3 }
  0x2a   :  { %p138_p6 = pnand %p137_p5, %p131_p2 }
  0x2c   :  { %141 = shalt.err (!%p138_p6)
}
  0x2d   :  { %s142_s16 = scalar_lea.hbm %s233_s2, 256 }
  0x2e   :  { %p143_p7 = scmp.ne.s32.totalorder %s233_s2, %s142_s16  ;;  %p146_p8 = scmp.lt.u32.totalorder %s142_s16, %s233_s2 }
  0x30   :  { %p148_p9 = pnand %p146_p8, %p143_p7 }
  0x32   :  { %151 = shalt.err (!%p148_p9)
}
  0x33   :  { %58 = dma.vmem_to_hbm [thread:$0]  %s200_s0, 256, %s233_s2, [#allocation4]  }
  0x34   :  { %154 = dma.done.wait [#allocation4], 256  }
  0x35   :  { %155 = vsyncadd [#allocation4], 4294967040 }
  0x36   :  { %156 = dma.done.wait [#allocation7], 256  }
  0x37   :  { %157 = vsyncadd [#allocation7], 4294967040 }
  0x38   :  { %75 = vsyncpa [#allocation3], 1 }
  0x39   :  { %76 = vsyncpa [#allocation4], 1 }
  0x3a   :  { %77 = vsyncpa [#allocation7], 1 }

</bundles_post_ra>
